<compile_context>
chip_gen: v7x
topology: tpu7x:2x2x1
jax: 0.10.0
libtpu: 0.0.40
codegen_flags: <defaults>
</compile_context>

<pallas_src>
import functools
import math

import jax
import jax.numpy as jnp
from jax.experimental import pallas as pl
from jax.experimental.pallas import tpu as pltpu


def _round_up(x: int, m: int) -> int:
    return ((x + m - 1) // m) * m


# --------------------------------------------------------------------------
# Fused MLP kernel: out = x @ W0 -> ReLU -> @ W1 -> ReLU -> ... -> @ W_{L-1}
# All intermediates live in vregs/VMEM; weights loaded at point of use.
# --------------------------------------------------------------------------
def _mlp_kernel(x_ref, *rest):
    *w_refs, o_ref = rest
    n = len(w_refs)
    h = x_ref[...]
    for li, w_ref in enumerate(w_refs):
        h = jnp.dot(h, w_ref[...], preferred_element_type=jnp.float32)
        if li < n - 1:                      # act=nn.ReLU() on all but last layer
            h = jnp.maximum(h, 0.0)
    o_ref[...] = h.astype(o_ref.dtype)


# --------------------------------------------------------------------------
# Wrapper mirroring MLP.forward: flatten leading dims, run layers, reshape back
# --------------------------------------------------------------------------
def mlp_forward(weights, x, *, row_tile=128):
    *dims, d_in = x.shape
    assert weights[0].shape[0] == d_in
    d_out = weights[-1].shape[1]

    # `x = x.reshape(-1, d)` from the reference forward (layout-only prep).
    x2 = x.reshape(-1, d_in)
    m = x2.shape[0]

    # Largest row tile that is a multiple of 8 sublanes and <= row_tile.
    tm = min(row_tile, _round_up(m, 8))
    m_pad = _round_up(m, tm)
    if m_pad != m:
        # Bias-free layers -> zero rows stay zero; sliced away below.
        x2 = jnp.pad(x2, ((0, m_pad - m), (0, 0)))

    grid = (m_pad // tm,)

    in_specs = [pl.BlockSpec((tm, d_in), lambda i: (i, 0))]
    in_specs += [pl.BlockSpec(w.shape, lambda i: (0, 0)) for w in weights]

    # Advisory cost estimate (review item): ~2*M*sum(K*N) flops, IO bytes.
    flops = 0
    prev = d_in
    for w in weights:
        flops += 2 * m_pad * prev * w.shape[1]
        prev = w.shape[1]
    bytes_accessed = (x2.size + sum(w.size for w in weights) + m_pad * d_out) * 4

    out = pl.pallas_call(
        _mlp_kernel,
        grid=grid,
        in_specs=in_specs,
        out_specs=pl.BlockSpec((tm, d_out), lambda i: (i, 0)),
        out_shape=jax.ShapeDtypeStruct((m_pad, d_out), jnp.float32),
        compiler_params=pltpu.CompilerParams(
            dimension_semantics=("parallel",)),      # v7x: shard rows over 2 TCs
        cost_estimate=pl.CostEstimate(
            flops=flops, transcendentals=0, bytes_accessed=bytes_accessed),
    )(x2, *weights)

    out = out[:m]
    # `return x.view(*dims, -1)` from the reference forward.
    return out.reshape(*dims, d_out)


# --------------------------------------------------------------------------
# Deterministic synthetic parameters for the default MLP config
#   n_layers=3, d_in=32, d_out=d_in, d_hidden=4*d_in=128, bias-free
# --------------------------------------------------------------------------
def init_mlp_params(key, n_layers, d_in, d_out=None, d_hidden=None):
    if d_out is None:
        d_out = d_in
    if d_hidden is None:
        d_hidden = 4 * d_in
    dims_in = [d_in] + [d_hidden] * (n_layers - 1)
    dims_out = [d_hidden] * (n_layers - 1) + [d_out]
    keys = jax.random.split(key, n_layers)
    return tuple(
        jax.random.normal(keys[i], (dims_in[i], dims_out[i]), jnp.float32)
        / math.sqrt(dims_in[i])
        for i in range(n_layers))


# --------------------------------------------------------------------------
if __name__ == "__main__":
    key = jax.random.PRNGKey(0)
    kx, kp = jax.random.split(key, 2)

    n_layers, d_in = 3, 32                       # d_hidden=128, d_out=32
    weights = init_mlp_params(kp, n_layers, d_in)

    # x: (*dims, d_in) with multiple leading dims, as the module supports.
    x = jax.random.normal(kx, (2, 128, d_in), jnp.float32)

    fwd = jax.jit(mlp_forward)
    out = fwd(weights, x)
    jax.block_until_ready(out)

    # Pure-JAX reference of the same MLP (bias-free linears + ReLU).
    ref = x.reshape(-1, d_in)
    for i, w in enumerate(weights):
        ref = ref @ w
        if i < n_layers - 1:
            ref = jnp.maximum(ref, 0.0)
    ref = ref.reshape(x.shape[0], x.shape[1], weights[-1].shape[1])

    assert out.shape == ref.shape
    assert jnp.allclose(out, ref, atol=1e-4, rtol=1e-4), "mismatch vs reference"

    print("KERNEL_OK")
</pallas_src>

<mosaic_0001>
module attributes {stable_mosaic.version = 11 : i64} {
  func.func @_mlp_kernel(%arg0: i32, %arg1: memref<128x32xf32, #tpu.memory_space<vmem>>, %arg2: memref<32x128xf32, #tpu.memory_space<vmem>>, %arg3: memref<128x128xf32, #tpu.memory_space<vmem>>, %arg4: memref<128x32xf32, #tpu.memory_space<vmem>>, %arg5: memref<128x32xf32, #tpu.memory_space<vmem>>) attributes {dimension_semantics = [#tpu.dimension_semantics<parallel>], iteration_bounds = array<i64: 2>, scalar_prefetch = 0 : i64, scratch_operands = 0 : i64, tpu.core_type = #tpu.core_type<tc>, window_params = [{transform_indices = @transform_0, window_bounds = array<i64: 128, 32>}, {pipeline_mode = #tpu.pipeline_mode<synchronous>, transform_indices = @transform_1, window_bounds = array<i64: 32, 128>}, {pipeline_mode = #tpu.pipeline_mode<synchronous>, transform_indices = @transform_2, window_bounds = array<i64: 128, 128>}, {pipeline_mode = #tpu.pipeline_mode<synchronous>, transform_indices = @transform_3, window_bounds = array<i64: 128, 32>}, {transform_indices = @transform_4, window_bounds = array<i64: 128, 32>}]} {
    %c0 = arith.constant 0 : index
    %c0_0 = arith.constant 0 : index
    %0 = vector.load %arg1[%c0, %c0_0] : memref<128x32xf32, #tpu.memory_space<vmem>>, vector<128x32xf32>
    %c0_1 = arith.constant 0 : index
    %c0_2 = arith.constant 0 : index
    %1 = vector.load %arg2[%c0_1, %c0_2] : memref<32x128xf32, #tpu.memory_space<vmem>>, vector<32x128xf32>
    %cst = arith.constant dense<0.000000e+00> : vector<128x128xf32>
    %2 = tpu.matmul %0, %1, %cst {dimension_numbers = #tpu.dot_dimension_numbers<[1], [0], [0], [1], [0, 0, 1, 1], [], []>} : vector<128x32xf32>, vector<32x128xf32>, vector<128x128xf32> -> vector<128x128xf32>
    %cst_3 = arith.constant 0.000000e+00 : f32
    %3 = vector.broadcast %cst_3 : f32 to vector<128x128xf32>
    %4 = arith.maximumf %2, %3 : vector<128x128xf32>
    %c0_4 = arith.constant 0 : index
    %c0_5 = arith.constant 0 : index
    %5 = vector.load %arg3[%c0_4, %c0_5] : memref<128x128xf32, #tpu.memory_space<vmem>>, vector<128x128xf32>
    %cst_6 = arith.constant dense<0.000000e+00> : vector<128x128xf32>
    %6 = tpu.matmul %4, %5, %cst_6 {dimension_numbers = #tpu.dot_dimension_numbers<[1], [0], [0], [1], [0, 0, 1, 1], [], []>} : vector<128x128xf32>, vector<128x128xf32>, vector<128x128xf32> -> vector<128x128xf32>
    %cst_7 = arith.constant 0.000000e+00 : f32
    %7 = vector.broadcast %cst_7 : f32 to vector<128x128xf32>
    %8 = arith.maximumf %6, %7 : vector<128x128xf32>
    %c0_8 = arith.constant 0 : index
    %c0_9 = arith.constant 0 : index
    %9 = vector.load %arg4[%c0_8, %c0_9] : memref<128x32xf32, #tpu.memory_space<vmem>>, vector<128x32xf32>
    %cst_10 = arith.constant dense<0.000000e+00> : vector<128x32xf32>
    %10 = tpu.matmul %8, %9, %cst_10 {dimension_numbers = #tpu.dot_dimension_numbers<[1], [0], [0], [1], [0, 0, 1, 1], [], []>} : vector<128x128xf32>, vector<128x32xf32>, vector<128x32xf32> -> vector<128x32xf32>
    %c0_11 = arith.constant 0 : index
    %c0_12 = arith.constant 0 : index
    %11 = vector.load %arg5[%c0_11, %c0_12] : memref<128x32xf32, #tpu.memory_space<vmem>>, vector<128x32xf32>
    tpu.vector_store %arg5[%c0_11, %c0_12], %10 {strides = array<i32>} : memref<128x32xf32, #tpu.memory_space<vmem>>, vector<128x32xf32>,
    return
  }
  func.func @transform_0(%arg0: i32) -> (i32, i32) {
    %c0_i32 = arith.constant 0 : i32
    %c0_i32_0 = arith.constant 0 : i32
    return %arg0, %c0_i32 : i32, i32
  }
  func.func @transform_1(%arg0: i32) -> (i32, i32) {
    %c0_i32 = arith.constant 0 : i32
    %c0_i32_0 = arith.constant 0 : i32
    %c0_i32_1 = arith.constant 0 : i32
    return %c0_i32, %c0_i32_0 : i32, i32
  }
  func.func @transform_2(%arg0: i32) -> (i32, i32) {
    %c0_i32 = arith.constant 0 : i32
    %c0_i32_0 = arith.constant 0 : i32
    %c0_i32_1 = arith.constant 0 : i32
    return %c0_i32, %c0_i32_0 : i32, i32
  }
  func.func @transform_3(%arg0: i32) -> (i32, i32) {
    %c0_i32 = arith.constant 0 : i32
    %c0_i32_0 = arith.constant 0 : i32
    %c0_i32_1 = arith.constant 0 : i32
    return %c0_i32, %c0_i32_0 : i32, i32
  }
  func.func @transform_4(%arg0: i32) -> (i32, i32) {
    %c0_i32 = arith.constant 0 : i32
    %c0_i32_0 = arith.constant 0 : i32
    return %arg0, %c0_i32 : i32, i32
  }
}

</mosaic_0001>

<bundles_post_ra>
// kernel: mlp_forward.1
= control target key start
LH: loop header
LB: loop body
LE: loop exit
PB: predicated region body
PF: predicated region fallthrough
CT: control target
= control target key end

     0   :  { %s1225_s15 = smov 0   ;;  %s1425_s0 = inlined_call_operand.vmem [shape: f32[256,32], index: 0, kind: input, shape index: {}]   ;;  %s1426_s1 = inlined_call_operand.vmem [shape: f32[32,128], index: 1, kind: input, shape index: {}]   ;;  %s1427_s2 = inlined_call_operand.vmem [shape: f32[128,128], index: 2, kind: input, shape index: {}]   ;;  %s1428_s3 = inlined_call_operand.vmem [shape: f32[128,32], index: 3, kind: input, shape index: {}]   ;;  %s1429_s4 = inlined_call_operand.vmem [shape: f32[256,32], index: 4, kind: output, shape index: {}]  }
   0x1 LB: > { %s841_s16 = sadd.s32 4294967295, %s1198_s15   ;;  %p845_p0 = scmp.ge.s32.totalorder %s1198_s15, 1  ;;  %s1198_s15 = sphi %s1225_s15, %s14_s15  }
   0x2   : > { %p163_p1 = scmp.lt.s32.totalorder %s1198_s15, 3 }
   0x4   : > { %p164_p2 = pnand %p845_p0, %p163_p1 }
   0x5   : > { %v217_v0 = vld [vmem:[%s1426_s1] sm:$0xff] (!%p164_p2)  ;;  %v218_v1 = vld [vmem:[%s1426_s1 + $0x8] sm:$0xff] (!%p164_p2)  ;;  %v219_v2 = vld [vmem:[%s1426_s1 + $0x10] sm:$0xff] (!%p164_p2)  ;;  %s846_s23 = sshll.u32 (!%p164_p2), %s841_s16, 4  ;;  %vm221_vm0 = vcmask (!%p164_p2), 261120  }
   0x6   : > { %167 = sbr.rel (%p164_p2) target bundleno = 692 (0x2b4), region = 36  ;;  %v1096_v3 = vpack.c.bf16 (!%p164_p2), %v218_v1, %v217_v0  ;;  %v220_v4 = vld [vmem:[%s1426_s1 + $0x18] sm:$0xff] (!%p164_p2)  ;;  %p190_p3 = scmp.lt.s32.totalorder (!%p164_p2), %s846_s23, 31  ;;  %v431_v5 = vld [vmem:[%s1427_s2] sm:$0xff] (!%p164_p2)  ;;  %v432_v6 = vld [vmem:[%s1427_s2 + $0x8] sm:$0xff] (!%p164_p2) }
   0x7   : > { %v1100_v7 = vpack.c.bf16 (!%p164_p2), %v220_v4, %v219_v2  ;;  %v1104_v8 = vpack.c.bf16 (!%p164_p2), %v432_v6, %v431_v5  ;;  %v433_v9 = vld [vmem:[%s1427_s2 + $0x10] sm:$0xff] (!%p164_p2)  ;;  %v434_v10 = vld [vmem:[%s1427_s2 + $0x18] sm:$0xff] (!%p164_p2)  ;;  %v435_v12 = vld [vmem:[%s1427_s2 + $0x20] sm:$0xff] (!%p164_p2) }
   0x8   : > { %1097 = vmatprep.subr.bf16.mxu0 (!%p164_p2), %v1096_v3  ;;  %v1108_v11 = vpack.c.bf16 (!%p164_p2), %v434_v10, %v433_v9  ;;  %v436_v13 = vld [vmem:[%s1427_s2 + $0x28] sm:$0xff] (!%p164_p2)  ;;  %v437_v16 = vld [vmem:[%s1427_s2 + $0x30] sm:$0xff] (!%p164_p2)  ;;  %v438_v17 = vld [vmem:[%s1427_s2 + $0x38] sm:$0xff] (!%p164_p2) }
   0x9   : > { %1099 = vmatpush3.bf16.msra.mxu0 (!%p164_p2), %v1096_v3  ;;  %1105 = vmatprep.subr.bf16.mxu1 (!%p164_p2), %v1104_v8  ;;  %v1112_v14 = vpack.c.bf16 (!%p164_p2), %v436_v13, %v435_v12  ;;  %v1116_v20 = vpack.c.bf16 (!%p164_p2), %v438_v17, %v437_v16  ;;  %v439_v21 = vld [vmem:[%s1427_s2 + $0x40] sm:$0xff] (!%p164_p2)  ;;  %v440_v22 = vld [vmem:[%s1427_s2 + $0x48] sm:$0xff] (!%p164_p2)  ;;  %v441_v26 = vld [vmem:[%s1427_s2 + $0x50] sm:$0xff] (!%p164_p2) }
   0xa   : > { %1101 = vmatprep.subr.bf16.mxu0 (!%p164_p2), %v1100_v7  ;;  %1107 = vmatpush3.bf16.msra.mxu1 (!%p164_p2), %v1104_v8  ;;  %v1120_v25 = vpack.c.bf16 (!%p164_p2), %v440_v22, %v439_v21  ;;  %v442_v27 = vld [vmem:[%s1427_s2 + $0x58] sm:$0xff] (!%p164_p2)  ;;  %v443_v31 = vld [vmem:[%s1427_s2 + $0x60] sm:$0xff] (!%p164_p2)  ;;  %v444_v32 = vld [vmem:[%s1427_s2 + $0x68] sm:$0xff] (!%p164_p2) }
   0xb   : > { %1109 = vmatprep.subr.bf16.mxu1 (!%p164_p2), %v1108_v11  ;;  %v1124_v30 = vpack.c.bf16 (!%p164_p2), %v442_v27, %v441_v26  ;;  %v1128_v35 = vpack.c.bf16 (!%p164_p2), %v444_v32, %v443_v31  ;;  %v445_v43 = vld [vmem:[%s1427_s2 + $0x70] sm:$0xff] (!%p164_p2)  ;;  %v446_v44 = vld [vmem:[%s1427_s2 + $0x78] sm:$0xff] (!%p164_p2)  ;;  %v608_v46 = vld [vmem:[%s1428_s3] sm:$0xff] (!%p164_p2) }
   0xc   : > { %v1132_v45 = vpack.c.bf16 (!%p164_p2), %v446_v44, %v445_v43  ;;  %v609_v47 = vld [vmem:[%s1428_s3 + $0x8] sm:$0xff] (!%p164_p2)  ;;  %v610_v48 = vld [vmem:[%s1428_s3 + $0x10] sm:$0xff] (!%p164_p2)  ;;  %v611_v50 = vld [vmem:[%s1428_s3 + $0x18] sm:$0xff] (!%p164_p2) }
   0xd   : > { %s1431_s23 = smov (!%p190_p3, %s846_s23), 31  ;;  %1103 = vmatpush3.bf16.msra.mxu0 %v1100_v7  ;;  %v1136_v49 = vpack.c.bf16 %v609_v47, %v608_v46  ;;  %v1140_v51 = vpack.c.bf16 %v611_v50, %v610_v48  ;;  %v612_v52 = vld [vmem:[%s1428_s3 + $0x20] sm:$0xff]  ;;  %v613_v53 = vld [vmem:[%s1428_s3 + $0x28] sm:$0xff]  ;;  %v614_v55 = vld [vmem:[%s1428_s3 + $0x30] sm:$0xff] }
   0xe   : > { %s847_s12 = sshll.u32 %s1431_s23, 3  ;;  %1111 = vmatpush3.bf16.msra.mxu1 %v1108_v11  ;;  %v1144_v54 = vpack.c.bf16 %v613_v53, %v612_v52  ;;  %v615_v56 = vld [vmem:[%s1428_s3 + $0x38] sm:$0xff]  ;;  %v616_v58 = vld [vmem:[%s1428_s3 + $0x40] sm:$0xff]  ;;  %v617_v59 = vld [vmem:[%s1428_s3 + $0x48] sm:$0xff] }
   0xf   : > { %s1271_s16 = scalar_lea.vmem %s1425_s0, %s847_s12  ;;  %1113 = vmatprep.subr.bf16.mxu1 %v1112_v14  ;;  %1137 = vmatprep.subr.bf16.mxu0 %v1136_v49  ;;  %v1148_v57 = vpack.c.bf16 %v615_v56, %v614_v55  ;;  %v1152_v60 = vpack.c.bf16 %v617_v59, %v616_v58  ;;  %v618_v61 = vld [vmem:[%s1428_s3 + $0x50] sm:$0xff]  ;;  %v619_v62 = vld [vmem:[%s1428_s3 + $0x58] sm:$0xff]  ;;  %v620_v0 = vld [vmem:[%s1428_s3 + $0x60] sm:$0xff]  ;;  %s1388_s26 = scalar_lea.vmem %s1429_s4, %s847_s12 }
  0x10   : > { %v201_v15 = vld [vmem:[%s1271_s16] sm:$0xff]  ;;  %v202_v18 = vld [vmem:[%s1271_s16 + $0x8] sm:$0xff]  ;;  %v203_v19 = vld [vmem:[%s1271_s16 + $0x10] sm:$0xff]  ;;  %v1156_v63 = vpack.c.bf16 %v619_v62, %v618_v61 }
  0x11   : > { %960 = vmatprep.mubr.msk.f32.mxu0 %vm221_vm0, %v201_v15  ;;  %v204_v23 = vld [vmem:[%s1271_s16 + $0x18] sm:$0xff]  ;;  %v205_v24 = vld [vmem:[%s1271_s16 + $0x20] sm:$0xff]  ;;  %v206_v28 = vld [vmem:[%s1271_s16 + $0x28] sm:$0xff] }
  0x12   : > { %961 = vmatmul.mubr.msk.f32.vlgmr.msra.gmra.mrb[0].mxu0 %vm221_vm0, %v202_v18  ;;  %1115 = vmatpush3.bf16.msra.mxu1 %v1112_v14  ;;  %v207_v29 = vld [vmem:[%s1271_s16 + $0x30] sm:$0xff]  ;;  %v208_v33 = vld [vmem:[%s1271_s16 + $0x38] sm:$0xff]  ;;  %v209_v34 = vld [vmem:[%s1271_s16 + $0x40] sm:$0xff] }
  0x13   : > { %963 = vmatprep.mubr.msk.f32.mxu0 %vm221_vm0, %v203_v19  ;;  %1117 = vmatprep.subr.bf16.mxu1 %v1116_v20  ;;  %v210_v36 = vld [vmem:[%s1271_s16 + $0x48] sm:$0xff]  ;;  %v211_v37 = vld [vmem:[%s1271_s16 + $0x50] sm:$0xff]  ;;  %v212_v38 = vld [vmem:[%s1271_s16 + $0x58] sm:$0xff] }
  0x14   : > { %v213_v39 = vld [vmem:[%s1271_s16 + $0x60] sm:$0xff]  ;;  %v214_v40 = vld [vmem:[%s1271_s16 + $0x68] sm:$0xff]  ;;  %v215_v41 = vld [vmem:[%s1271_s16 + $0x70] sm:$0xff]  ;;  %1139 = vmatpush3.bf16.msra.mxu0 %v1136_v49 }
  0x15   : > { %v216_v42 = vld [vmem:[%s1271_s16 + $0x78] sm:$0xff]  ;;  %1141 = vmatprep.subr.bf16.mxu0 %v1140_v51  ;;  %v621_v1 = vld [vmem:[%s1428_s3 + $0x68] sm:$0xff] }
  0x16   : > { %964 = vmatmul.mubr.msk.f32.gmra.mrb[2].mxu0 %vm221_vm0, %v204_v23  ;;  %1119 = vmatpush3.bf16.msra.mxu1 %v1116_v20  ;;  %v1160_v2 = vpack.c.bf16 %v621_v1, %v620_v0 }
  0x17   : > { %966 = vmatprep.mubr.msk.f32.mxu0 %vm221_vm0, %v205_v24  ;;  %1121 = vmatprep.subr.bf16.mxu1 %v1120_v25 }
  0x18   : > { %1143 = vmatpush3.bf16.msra.mxu0 %v1140_v51 }
  0x19   : > { %1145 = vmatprep.subr.bf16.mxu0 %v1144_v54 }
  0x1a   : > { %967 = vmatmul.mubr.msk.f32.gmra.mrb[4].mxu0 %vm221_vm0, %v206_v28  ;;  %1123 = vmatpush3.bf16.msra.mxu1 %v1120_v25 }
  0x1b   : > { %969 = vmatprep.mubr.msk.f32.mxu0 %vm221_vm0, %v207_v29  ;;  %1125 = vmatprep.subr.bf16.mxu1 %v1124_v30 }
  0x1c   : > { %1147 = vmatpush3.bf16.msra.mxu0 %v1144_v54 }
  0x1d   : > { %1149 = vmatprep.subr.bf16.mxu0 %v1148_v57 }
  0x1e   : > { %970 = vmatmul.mubr.msk.f32.gmra.mrb[6].mxu0 %vm221_vm0, %v208_v33  ;;  %1127 = vmatpush3.bf16.msra.mxu1 %v1124_v30 }
  0x1f   : > { %972 = vmatprep.mubr.msk.f32.mxu0 %vm221_vm0, %v209_v34  ;;  %1129 = vmatprep.subr.bf16.mxu1 %v1128_v35 }
  0x20   : > { %1151 = vmatpush3.bf16.msra.mxu0 %v1148_v57 }
  0x21   : > { %1153 = vmatprep.subr.bf16.mxu0 %v1152_v60 }
  0x22   : > { %973 = vmatmul.mubr.msk.f32.gmra.mrb[8].mxu0 %vm221_vm0, %v210_v36  ;;  %1131 = vmatpush3.bf16.msra.mxu1 %v1128_v35  ;;  %v622_v35 = vld [vmem:[%s1428_s3 + $0x70] sm:$0xff]  ;;  %v623_v36 = vld [vmem:[%s1428_s3 + $0x78] sm:$0xff] }
  0x23   : > { %975 = vmatprep.mubr.msk.f32.mxu0 %vm221_vm0, %v211_v37  ;;  %1133 = vmatprep.subr.bf16.mxu1 %v1132_v45  ;;  %v1164_v37 = vpack.c.bf16 %v623_v36, %v622_v35 }
  0x24   : > { %1155 = vmatpush3.bf16.msra.mxu0 %v1152_v60 }
  0x25   : > { %1157 = vmatprep.subr.bf16.mxu0 %v1156_v63 }
  0x26   : > { %976 = vmatmul.mubr.msk.f32.gmra.mrb[10].mxu0 %vm221_vm0, %v212_v38  ;;  %1135 = vmatpush3.bf16.msra.mxu1 %v1132_v45 }
  0x27   : > { %978 = vmatprep.mubr.msk.f32.mxu0 %vm221_vm0, %v213_v39  ;;  %1168 = vmatprep.subr.bf16.mxu1 %v1136_v49 }
  0x28   : > { %1159 = vmatpush3.bf16.msra.mxu0 %v1156_v63 }
  0x29   : > { %1161 = vmatprep.subr.bf16.mxu0 %v1160_v2 }
  0x2a   : > { %979 = vmatmul.mubr.msk.f32.gmra.mrb[12].mxu0 %vm221_vm0, %v214_v40 }
  0x2b   : > { %981 = vmatprep.mubr.msk.f32.mxu0 %vm221_vm0, %v215_v41 }
  0x2c   : > { %1163 = vmatpush3.bf16.msra.mxu0 %v1160_v2 }
  0x2d   : > { %1165 = vmatprep.subr.bf16.mxu0 %v1164_v37 }
  0x2e   : > { %982 = vmatmul.mubr.msk.f32.gmra.mrb[14].mxu0 %vm221_vm0, %v216_v42 }
  0x30   : > { %1167 = vmatpush3.bf16.msra.mxu0 %v1164_v37 }
  0xe5   : > { %v962_v3 = vpop.f32.mrb[0].mxu0 }
  0xe6   : > { %v336_v4 = vpop.f32.mrb[1].mxu0  ;;  %v416_v6 = vmax.f32 %v962_v3, 0.0 }
  0xe7   : > { %v415_v5 = vmax.f32 %v336_v4, 0.0 }
  0xe9   : > { %v965_v7 = vpop.f32.mrb[2].mxu0  ;;  %1016 = vmatprep.mubr.f32.mxu1 %v415_v5 }
  0xea   : > { %v346_v8 = vpop.f32.mrb[3].mxu0  ;;  %1017 = vmatmul.mubr.f32.vlgmr.msra.gmra.mrb[0].mxu1 %v416_v6  ;;  %v418_v10 = vmax.f32 %v965_v7, 0.0 }
  0xeb   : > { %v417_v9 = vmax.f32 %v346_v8, 0.0  ;;  %1176 = vmatpush3.bf16.msra.mxu1 %v1136_v49 }
  0xec   : > { %1169 = vmatprep.subr.bf16.mxu1 %v1140_v51 }
  0xed   : > { %v968_v11 = vpop.f32.mrb[4].mxu0  ;;  %1019 = vmatprep.mubr.f32.mxu1 %v417_v9 }
  0xee   : > { %v356_v12 = vpop.f32.mrb[5].mxu0  ;;  %1020 = vmatmul.mubr.f32.gmra.mrb[2].mxu1 %v418_v10  ;;  %v420_v14 = vmax.f32 %v968_v11, 0.0 }
  0xef   : > { %v419_v13 = vmax.f32 %v356_v12, 0.0  ;;  %1177 = vmatpush3.bf16.msra.mxu1 %v1140_v51 }
  0xf0   : > { %1170 = vmatprep.subr.bf16.mxu1 %v1144_v54 }
  0xf1   : > { %v971_v15 = vpop.f32.mrb[6].mxu0  ;;  %1022 = vmatprep.mubr.f32.mxu1 %v419_v13 }
  0xf2   : > { %v366_v16 = vpop.f32.mrb[7].mxu0  ;;  %1023 = vmatmul.mubr.f32.gmra.mrb[4].mxu1 %v420_v14  ;;  %v422_v18 = vmax.f32 %v971_v15, 0.0 }
  0xf3   : > { %v421_v17 = vmax.f32 %v366_v16, 0.0  ;;  %1178 = vmatpush3.bf16.msra.mxu1 %v1144_v54 }
  0xf4   : > { %1171 = vmatprep.subr.bf16.mxu1 %v1148_v57 }
  0xf5   : > { %v974_v19 = vpop.f32.mrb[8].mxu0  ;;  %1025 = vmatprep.mubr.f32.mxu1 %v421_v17 }
  0xf6   : > { %v376_v20 = vpop.f32.mrb[9].mxu0  ;;  %1026 = vmatmul.mubr.f32.gmra.mrb[6].mxu1 %v422_v18  ;;  %v424_v22 = vmax.f32 %v974_v19, 0.0 }
  0xf7   : > { %v423_v21 = vmax.f32 %v376_v20, 0.0  ;;  %1179 = vmatpush3.bf16.msra.mxu1 %v1148_v57 }
  0xf8   : > { %1172 = vmatprep.subr.bf16.mxu1 %v1152_v60 }
  0xf9   : > { %v977_v23 = vpop.f32.mrb[10].mxu0  ;;  %1028 = vmatprep.mubr.f32.mxu1 %v423_v21 }
  0xfa   : > { %v386_v24 = vpop.f32.mrb[11].mxu0  ;;  %1029 = vmatmul.mubr.f32.gmra.mrb[8].mxu1 %v424_v22  ;;  %v426_v26 = vmax.f32 %v977_v23, 0.0 }
  0xfb   : > { %v425_v25 = vmax.f32 %v386_v24, 0.0  ;;  %1180 = vmatpush3.bf16.msra.mxu1 %v1152_v60 }
  0xfc   : > { %1173 = vmatprep.subr.bf16.mxu1 %v1156_v63 }
  0xfd   : > { %v980_v27 = vpop.f32.mrb[12].mxu0  ;;  %1031 = vmatprep.mubr.f32.mxu1 %v425_v25 }
  0xfe   : > { %v396_v28 = vpop.f32.mrb[13].mxu0  ;;  %1032 = vmatmul.mubr.f32.gmra.mrb[10].mxu1 %v426_v26  ;;  %v428_v30 = vmax.f32 %v980_v27, 0.0 }
  0xff   : > { %v427_v29 = vmax.f32 %v396_v28, 0.0  ;;  %1181 = vmatpush3.bf16.msra.mxu1 %v1156_v63 }
 0x100   : > { %1174 = vmatprep.subr.bf16.mxu1 %v1160_v2 }
 0x101   : > { %v983_v31 = vpop.f32.mrb[14].mxu0  ;;  %1034 = vmatprep.mubr.f32.mxu1 %v427_v29 }
 0x102   : > { %v406_v32 = vpop.f32.mrb[15].mxu0  ;;  %1035 = vmatmul.mubr.f32.gmra.mrb[12].mxu1 %v428_v30  ;;  %v430_v34 = vmax.f32 %v983_v31, 0.0 }
 0x103   : > { %v429_v33 = vmax.f32 %v406_v32, 0.0  ;;  %1182 = vmatpush3.bf16.msra.mxu1 %v1160_v2 }
 0x104   : > { %1175 = vmatprep.subr.bf16.mxu1 %v1164_v37 }
 0x105   : > { %1037 = vmatprep.mubr.f32.mxu1 %v429_v33 }
 0x106   : > { %1038 = vmatmul.mubr.f32.gmra.mrb[14].mxu1 %v430_v34 }
 0x107   : > { %1183 = vmatpush3.bf16.msra.mxu1 %v1164_v37 }
 0x1bd   : > { %v1018_v38 = vpop.f32.mrb[0].mxu1 }
 0x1be   : > { %v513_v39 = vpop.f32.mrb[1].mxu1  ;;  %v593_v41 = vmax.f32 %v1018_v38, 0.0 }
 0x1bf   : > { %v592_v40 = vmax.f32 %v513_v39, 0.0 }
 0x1c1   : > { %v1021_v42 = vpop.f32.mrb[2].mxu1  ;;  %1072 = vmatprep.mubr.f32.mxu0 %v592_v40 }
 0x1c2   : > { %v523_v43 = vpop.f32.mrb[3].mxu1  ;;  %1073 = vmatmul.mubr.f32.vlgmr.msra.gmra.mrb[16].mxu0 %v593_v41  ;;  %v595_v45 = vmax.f32 %v1021_v42, 0.0 }
 0x1c3   : > { %v594_v44 = vmax.f32 %v523_v43, 0.0 }
 0x1c5   : > { %v1024_v46 = vpop.f32.mrb[4].mxu1  ;;  %1075 = vmatprep.mubr.f32.mxu0 %v594_v44 }
 0x1c6   : > { %v533_v47 = vpop.f32.mrb[5].mxu1  ;;  %1076 = vmatmul.mubr.f32.gmra.mrb[18].mxu0 %v595_v45  ;;  %v597_v49 = vmax.f32 %v1024_v46, 0.0 }
 0x1c7   : > { %v596_v48 = vmax.f32 %v533_v47, 0.0 }
 0x1c9   : > { %v1027_v50 = vpop.f32.mrb[6].mxu1  ;;  %1078 = vmatprep.mubr.f32.mxu0 %v596_v48 }
 0x1ca   : > { %v543_v51 = vpop.f32.mrb[7].mxu1  ;;  %1079 = vmatmul.mubr.f32.gmra.mrb[20].mxu0 %v597_v49  ;;  %v599_v53 = vmax.f32 %v1027_v50, 0.0 }
 0x1cb   : > { %v598_v52 = vmax.f32 %v543_v51, 0.0 }
 0x1cd   : > { %v1030_v54 = vpop.f32.mrb[8].mxu1  ;;  %1081 = vmatprep.mubr.f32.mxu0 %v598_v52 }
 0x1ce   : > { %v553_v55 = vpop.f32.mrb[9].mxu1  ;;  %1082 = vmatmul.mubr.f32.gmra.mrb[22].mxu0 %v599_v53  ;;  %v601_v57 = vmax.f32 %v1030_v54, 0.0 }
 0x1cf   : > { %v600_v56 = vmax.f32 %v553_v55, 0.0 }
 0x1d1   : > { %v1033_v58 = vpop.f32.mrb[10].mxu1  ;;  %1084 = vmatprep.mubr.f32.mxu0 %v600_v56 }
 0x1d2   : > { %v563_v59 = vpop.f32.mrb[11].mxu1  ;;  %1085 = vmatmul.mubr.f32.gmra.mrb[24].mxu0 %v601_v57  ;;  %v603_v61 = vmax.f32 %v1033_v58, 0.0 }
 0x1d3   : > { %v602_v60 = vmax.f32 %v563_v59, 0.0 }
 0x1d5   : > { %v1036_v62 = vpop.f32.mrb[12].mxu1  ;;  %1087 = vmatprep.mubr.f32.mxu0 %v602_v60 }
 0x1d6   : > { %v573_v63 = vpop.f32.mrb[13].mxu1  ;;  %1088 = vmatmul.mubr.f32.gmra.mrb[26].mxu0 %v603_v61  ;;  %v605_v1 = vmax.f32 %v1036_v62, 0.0 }
 0x1d7   : > { %v604_v0 = vmax.f32 %v573_v63, 0.0 }
 0x1d9   : > { %v1039_v2 = vpop.f32.mrb[14].mxu1  ;;  %1090 = vmatprep.mubr.f32.mxu0 %v604_v0 }
 0x1da   : > { %v583_v3 = vpop.f32.mrb[15].mxu1  ;;  %1091 = vmatmul.mubr.f32.gmra.mrb[28].mxu0 %v605_v1  ;;  %v607_v5 = vmax.f32 %v1039_v2, 0.0 }
 0x1db   : > { %v606_v4 = vmax.f32 %v583_v3, 0.0 }
 0x1dd   : > { %1093 = vmatprep.mubr.f32.mxu1 %v606_v4 }
 0x1de   : > { %1094 = vmatmul.mubr.f32.vlgmr.msra.gmra.mrb[16].mxu1 %v607_v5 }
 0x295   : > { %v1074_v6 = vpop.f32.mrb[16].mxu0 }
 0x296   : > { %770 = vst.msk [vmem:[%s1388_s26 + $0x8] sm:$0xff] %vm221_vm0, %v1074_v6  ;;  %v690_v7 = vpop.f32.mrb[17].mxu0 }
 0x297   : > { %769 = vst.msk [vmem:[%s1388_s26] sm:$0xff] %vm221_vm0, %v690_v7 }
 0x299   : > { %v1077_v8 = vpop.f32.mrb[18].mxu0 }
 0x29a   : > { %772 = vst.msk [vmem:[%s1388_s26 + $0x18] sm:$0xff] %vm221_vm0, %v1077_v8  ;;  %v700_v9 = vpop.f32.mrb[19].mxu0 }
 0x29b   : > { %771 = vst.msk [vmem:[%s1388_s26 + $0x10] sm:$0xff] %vm221_vm0, %v700_v9 }
 0x29d   : > { %v1080_v10 = vpop.f32.mrb[20].mxu0 }
 0x29e   : > { %774 = vst.msk [vmem:[%s1388_s26 + $0x28] sm:$0xff] %vm221_vm0, %v1080_v10  ;;  %v710_v11 = vpop.f32.mrb[21].mxu0 }
 0x29f   : > { %773 = vst.msk [vmem:[%s1388_s26 + $0x20] sm:$0xff] %vm221_vm0, %v710_v11 }
 0x2a1   : > { %v1083_v12 = vpop.f32.mrb[22].mxu0 }
 0x2a2   : > { %776 = vst.msk [vmem:[%s1388_s26 + $0x38] sm:$0xff] %vm221_vm0, %v1083_v12  ;;  %v720_v13 = vpop.f32.mrb[23].mxu0 }
 0x2a3   : > { %775 = vst.msk [vmem:[%s1388_s26 + $0x30] sm:$0xff] %vm221_vm0, %v720_v13 }
 0x2a5   : > { %v1086_v14 = vpop.f32.mrb[24].mxu0 }
 0x2a6   : > { %778 = vst.msk [vmem:[%s1388_s26 + $0x48] sm:$0xff] %vm221_vm0, %v1086_v14  ;;  %v730_v15 = vpop.f32.mrb[25].mxu0 }
 0x2a7   : > { %777 = vst.msk [vmem:[%s1388_s26 + $0x40] sm:$0xff] %vm221_vm0, %v730_v15 }
 0x2a9   : > { %v1089_v16 = vpop.f32.mrb[26].mxu0 }
 0x2aa   : > { %780 = vst.msk [vmem:[%s1388_s26 + $0x58] sm:$0xff] %vm221_vm0, %v1089_v16  ;;  %v740_v17 = vpop.f32.mrb[27].mxu0 }
 0x2ab   : > { %779 = vst.msk [vmem:[%s1388_s26 + $0x50] sm:$0xff] %vm221_vm0, %v740_v17 }
 0x2ad   : > { %v1092_v18 = vpop.f32.mrb[28].mxu0 }
 0x2ae   : > { %782 = vst.msk [vmem:[%s1388_s26 + $0x68] sm:$0xff] %vm221_vm0, %v1092_v18  ;;  %v750_v19 = vpop.f32.mrb[29].mxu0 }
 0x2af   : > { %781 = vst.msk [vmem:[%s1388_s26 + $0x60] sm:$0xff] %vm221_vm0, %v750_v19 }
 0x2b1   : > { %v1095_v20 = vpop.f32.mrb[16].mxu1 }
 0x2b2   : > { %784 = vst.msk [vmem:[%s1388_s26 + $0x78] sm:$0xff] %vm221_vm0, %v1095_v20  ;;  %v760_v21 = vpop.f32.mrb[17].mxu1 }
 0x2b3   : > { %783 = vst.msk [vmem:[%s1388_s26 + $0x70] sm:$0xff] %vm221_vm0, %v760_v21 }
 0x2b4 PF: > { %s14_s15 = sadd.s32 1, %s1198_s15  }
 0x2b5   : > { %p11_p4 = scmp.ge.s32.totalorder %s14_s15, 4  }
 0x2b7   :  { %13 = sbr.rel (!%p11_p4) target bundleno = 1 (0x1), region = 66 }

</bundles_post_ra>
